<compile_context>
chip_gen: v7x
topology: tpu7x:2x2x1
jax: 0.10.0
libtpu: 0.0.40
codegen_flags: <defaults>
</compile_context>

<pallas_src>
import functools

import numpy as np
import jax
from jax import lax
import jax.numpy as jnp
from jax.experimental import pallas as pl
from jax.experimental.pallas import tpu as pltpu

_NEG_BIG = -9000000000000000.0  # masking constant from the reference


# --------------------------------------------------------------------------
# Stage 1: raw edge weights  w_flat[b, i*N+j] = wew . relu(Wem @ ee[b, i*N+j])
# --------------------------------------------------------------------------
def _edge_weight_kernel(ee_ref, wem_ref, wew_ref, w_ref, *, tc):
    """One (batch, row-tile) grid step.

    ee_ref : (TN*N, De) f32  -- edge embeddings, original layout
    wem_ref: (He, De)   bf16 -- edge_mapping weight
    wew_ref: (He, 1)    f32  -- edge_weight_liner weight
    w_ref  : (1, TN*N)  f32  -- raw edge weights, flat index in lanes (dense)
    """
    rows = ee_ref.shape[0]
    for c in range(rows // tc):  # small static unroll; caps the f32 intermediate
        ee_c = ee_ref[pl.ds(c * tc, tc), :].astype(jnp.bfloat16)     # (tc, De)
        # ONE lane-wide MXU matmul; contraction over De = minor dim of both
        # operands (q @ k.T pattern -> no materialised transpose).
        m = lax.dot_general(
            wem_ref[...], ee_c,
            dimension_numbers=(((1,), (1,)), ((), ())),
            preferred_element_type=jnp.float32)                      # (He, tc)
        m = jnp.maximum(m, 0.0)   # relu (dropout_edge = identity at inference)
        # 1-wide projection kept OFF the MXU: VPU broadcast-multiply by wew,
        # then an XLU sublane reduce over He.  Result is lane-dense.
        w_ref[:, pl.ds(c * tc, tc)] = jnp.sum(
            m * wew_ref[...], axis=0, keepdims=True)                 # (1, tc)


# --------------------------------------------------------------------------
# Stage 2: row-mean normalise + adjacency mask + softmax + aggregate
# --------------------------------------------------------------------------
def _attention_kernel(w_ref, adj_ref, he_ref, hout_ref, aout_ref):
    """One (batch, query-row-tile) grid step.

    w_ref   : (TN, N) f32   raw edge weights
    adj_ref : (TN, N) f32
    he_ref  : (N, H)  bf16  precomputed edge_to(input) for this batch
    hout_ref: (TN, H) f32 ; aout_ref: (TN, N) f32
    """
    w = w_ref[...]                                                   # (TN, N)
    # row-wise normalisation: w / (|mean_j w| + 1e-10)  (exact math: the
    # mean-cancellation path is precision sensitive)
    row_mean = jnp.mean(w, axis=-1, keepdims=True)                   # (TN, 1)
    w = w / (jnp.abs(row_mean) + 1e-10)

    # adjacency mask + numerically stable softmax, all f32
    logits = jnp.where(adj_ref[...] != 0.0, w, _NEG_BIG)
    mx = jnp.max(logits, axis=-1, keepdims=True)
    e = jnp.exp(logits - mx)
    att = e / jnp.sum(e, axis=-1, keepdims=True)   # exact reciprocal (review)
    aout_ref[...] = att

    # h_edge = relu(att @ edge_to(input))  (bf16 operands, f32 accumulation)
    h = jnp.dot(att.astype(jnp.bfloat16), he_ref[...],
                preferred_element_type=jnp.float32)                  # (TN, H)
    hout_ref[...] = jnp.maximum(h, 0.0)


# --------------------------------------------------------------------------
# Tiling helpers
# --------------------------------------------------------------------------
def _pick_row_tile(n, de, target_bytes=512 * 1024):
    """Largest divisor TN of N giving an ee block (TN*N, De) near target_bytes
    while keeping TPU-friendly block shapes."""
    cap = max(1, target_bytes // max(1, n * de * 4))
    valid = [t for t in range(1, n + 1)
             if n % t == 0
             and (((t * n) % 128 == 0) or t == n)
             and ((t % 8 == 0) or t == n)]
    under = [t for t in valid if t <= cap]
    return max(under) if under else min(valid)


def _pick_chunk(rows, cap=512):
    """Lane-chunk for stage 1 (caps the (He, chunk) f32 intermediate)."""
    valid = [t for t in range(1, rows + 1)
             if rows % t == 0 and ((t % 128 == 0) or t == rows)]
    under = [t for t in valid if t <= cap]
    return max(under) if under else min(valid)


# --------------------------------------------------------------------------
# Wrapper
# --------------------------------------------------------------------------
@functools.partial(jax.jit, static_argnames=("row_tile",))
def trans_gat_forward(x, adj, edge_embedding, wem, wew, wet_t, bet, *,
                      row_tile=None):
    B, N, F = x.shape
    NN, De = edge_embedding.shape[1], edge_embedding.shape[2]
    He = wem.shape[1]
    H = wet_t.shape[1]
    assert NN == N * N

    TN = row_tile if row_tile is not None else _pick_row_tile(N, De)
    assert N % TN == 0
    assert ((TN * N) % 128 == 0) or TN == N
    TC = _pick_chunk(TN * N)

    # edge_to(input): plain dense layer, hoisted to XLA (tiny vs ee traffic).
    he = (jnp.matmul(x, wet_t) + bet).astype(jnp.bfloat16)           # (B, N, H)

    wem_t = wem.T.astype(jnp.bfloat16)                               # (He, De)
    wew_c = wew.astype(jnp.float32)                                  # (He, 1)

    cparams = pltpu.CompilerParams(
        dimension_semantics=("parallel", "parallel"),
        vmem_limit_bytes=32 * 1024 * 1024)

    # ---- stage 1: raw edge weights, consumed in the ORIGINAL ee layout ----
    k1 = functools.partial(_edge_weight_kernel, tc=TC)
    w_flat = pl.pallas_call(
        k1,
        out_shape=jax.ShapeDtypeStruct((B, 1, NN), jnp.float32),
        grid=(B, N // TN),
        in_specs=[
            pl.BlockSpec((None, TN * N, De), lambda b, r: (b, r, 0)),  # ee
            pl.BlockSpec((He, De), lambda b, r: (0, 0)),               # Wem
            pl.BlockSpec((He, 1), lambda b, r: (0, 0)),                # wew
        ],
        out_specs=pl.BlockSpec((None, 1, TN * N), lambda b, r: (b, 0, r)),
        compiler_params=cparams,
    )(edge_embedding, wem_t, wew_c)

    # Contiguous metadata-only reshape (no HBM relayout).
    w = w_flat.reshape(B, N, N)

    # ---- stage 2: normalise + mask + softmax + aggregate ----
    h_edge, att = pl.pallas_call(
        _attention_kernel,
        out_shape=(jax.ShapeDtypeStruct((B, N, H), jnp.float32),
                   jax.ShapeDtypeStruct((B, N, N), jnp.float32)),
        grid=(B, N // TN),
        in_specs=[
            pl.BlockSpec((None, TN, N), lambda b, r: (b, r, 0)),     # w
            pl.BlockSpec((None, TN, N), lambda b, r: (b, r, 0)),     # adj
            pl.BlockSpec((None, N, H), lambda b, r: (b, 0, 0)),      # he (const over r)
        ],
        out_specs=(
            pl.BlockSpec((None, TN, H), lambda b, r: (b, r, 0)),     # h_edge
            pl.BlockSpec((None, TN, N), lambda b, r: (b, r, 0)),     # attention
        ),
        compiler_params=cparams,
    )(w, adj, he)

    # PyTorch quirk: `.repeat(1,1,1,N)` on a 3-D tensor prepends a size-1 axis,
    # so the reference returns (1, B, N, H) / (1, B, N, N).
    return h_edge[None, ...], att[None, ...]


# --------------------------------------------------------------------------
# Pure-JAX reference mirroring the kernel's mixed-precision choices
# --------------------------------------------------------------------------
def trans_gat_reference(x, adj, edge_embedding, wem, wew, wet_t, bet):
    B, N, _ = x.shape
    bf = jnp.bfloat16
    m = jnp.matmul(edge_embedding.astype(bf), wem.astype(bf),
                   preferred_element_type=jnp.float32)
    m = jnp.maximum(m, 0.0)
    w = jnp.sum(m * wew.reshape(1, 1, -1), axis=-1).reshape(B, N, N)  # f32 proj
    w = w / (jnp.abs(jnp.mean(w, axis=-1, keepdims=True)) + 1e-10)
    logits = jnp.where(adj != 0, w, _NEG_BIG)
    att = jax.nn.softmax(logits, axis=-1)
    he = (jnp.matmul(x, wet_t) + bet).astype(bf)
    h_edge = jnp.maximum(
        jnp.matmul(att.astype(bf), he, preferred_element_type=jnp.float32), 0.0)
    return h_edge[None, ...], att[None, ...]


def _xavier_uniform(key, shape, gain=1.414):
    fan_in, fan_out = shape
    bound = gain * np.sqrt(6.0 / (fan_in + fan_out))
    return jax.random.uniform(key, shape, jnp.float32, -bound, bound)


if __name__ == "__main__":
    # Small, self-consistent shapes implied by the module
    # (in_features == opt.hidden_dim since edge_to is applied to `input`).
    B, N = 2, 16
    F = H = 32          # in_features == opt.hidden_dim
    De = 32             # opt.dependency_edge_dim
    He = 32             # opt.edge_hidden_dim

    key = jax.random.PRNGKey(0)
    k_x, k_adj, k_ee, k1, k2, k3, k4 = jax.random.split(key, 7)

    x = jax.random.normal(k_x, (B, N, F), jnp.float32)
    adj = (jax.random.uniform(k_adj, (B, N, N)) > 0.4).astype(jnp.float32)
    adj = jnp.maximum(adj, jnp.eye(N, dtype=jnp.float32)[None])   # self loops
    edge_embedding = jax.random.normal(k_ee, (B, N * N, De), jnp.float32)

    # Deterministic synthetic parameters (shapes from __init__):
    wem = _xavier_uniform(k1, (De, He))          # edge_mapping.weight^T
    wew = _xavier_uniform(k2, (He, 1))           # edge_weight_liner.weight^T
    wet_t = _xavier_uniform(k3, (F, H))          # edge_to.weight^T  (in, out)
    bet = 0.01 * jax.random.normal(k4, (1, H), jnp.float32)  # edge_to.bias

    h_edge, attention_edge = trans_gat_forward(
        x, adj, edge_embedding, wem, wew, wet_t, bet)
    jax.block_until_ready((h_edge, attention_edge))

    assert h_edge.shape == (1, B, N, H)
    assert attention_edge.shape == (1, B, N, N)

    att_np = np.asarray(attention_edge)
    he_np = np.asarray(h_edge)
    assert np.all(np.isfinite(att_np)) and np.all(np.isfinite(he_np))
    # attention rows must sum to ~1 (exact reciprocal in the denominator now)
    assert np.allclose(att_np.sum(axis=-1), 1.0, atol=1e-3)

    h_ref, att_ref = trans_gat_reference(
        x, adj, edge_embedding, wem, wew, wet_t, bet)
    jax.block_until_ready((h_ref, att_ref))
    assert np.allclose(att_np, np.asarray(att_ref), atol=2e-2)
    assert np.allclose(he_np, np.asarray(h_ref), rtol=5e-2, atol=5e-2)

    print("KERNEL_OK")
</pallas_src>

<mosaic_0001>
module attributes {stable_mosaic.version = 11 : i64} {
  func.func @_edge_weight_kernel(%arg0: i32, %arg1: i32, %arg2: memref<1x256x32xf32, #tpu.memory_space<vmem>>, %arg3: memref<32x32xbf16, #tpu.memory_space<vmem>>, %arg4: memref<32x1xf32, #tpu.memory_space<vmem>>, %arg5: memref<1x1x256xf32, #tpu.memory_space<vmem>>) attributes {dimension_semantics = [#tpu.dimension_semantics<parallel>, #tpu.dimension_semantics<parallel>], iteration_bounds = array<i64: 2, 1>, scalar_prefetch = 0 : i64, scratch_operands = 0 : i64, tpu.core_type = #tpu.core_type<tc>, window_params = [{transform_indices = @transform_0, window_bounds = array<i64: 1, 256, 32>}, {pipeline_mode = #tpu.pipeline_mode<synchronous>, transform_indices = @transform_1, window_bounds = array<i64: 32, 32>}, {pipeline_mode = #tpu.pipeline_mode<synchronous>, transform_indices = @transform_2, window_bounds = array<i64: 32, 1>}, {transform_indices = @transform_3, window_bounds = array<i64: 1, 1, 256>}]} {
    %c0 = arith.constant 0 : index
    %c0_0 = arith.constant 0 : index
    %c0_1 = arith.constant 0 : index
    %0 = vector.load %arg2[%c0, %c0_0, %c0_1] : memref<1x256x32xf32, #tpu.memory_space<vmem>>, vector<1x256x32xf32>
    %1 = vector.shape_cast %0 : vector<1x256x32xf32> to vector<256x32xf32>
    %2 = arith.truncf %1 : vector<256x32xf32> to vector<256x32xbf16>
    %c0_2 = arith.constant 0 : index
    %c0_3 = arith.constant 0 : index
    %3 = vector.load %arg3[%c0_2, %c0_3] : memref<32x32xbf16, #tpu.memory_space<vmem>>, vector<32x32xbf16>
    %cst = arith.constant dense<0.000000e+00> : vector<32x256xf32>
    %4 = tpu.matmul %3, %2, %cst {dimension_numbers = #tpu.dot_dimension_numbers<[1], [1], [0], [0], [0, 0, 1, 0], [], []>} : vector<32x32xbf16>, vector<256x32xbf16>, vector<32x256xf32> -> vector<32x256xf32>
    %cst_4 = arith.constant 0.000000e+00 : f32
    %5 = vector.broadcast %cst_4 : f32 to vector<32x256xf32>
    %6 = arith.maximumf %4, %5 : vector<32x256xf32>
    %c0_5 = arith.constant 0 : index
    %c0_6 = arith.constant 0 : index
    %7 = vector.load %arg4[%c0_5, %c0_6] : memref<32x1xf32, #tpu.memory_space<vmem>>, vector<32x1xf32>
    %8 = vector.broadcast %7 : vector<32x1xf32> to vector<32x256xf32>
    %9 = arith.mulf %6, %8 : vector<32x256xf32>
    %cst_7 = arith.constant dense<0.000000e+00> : vector<256xf32>
    %10 = vector.multi_reduction <add>, %9, %cst_7 [0] : vector<32x256xf32> to vector<256xf32>
    %11 = vector.shape_cast %10 : vector<256xf32> to vector<1x256xf32>
    %c0_8 = arith.constant 0 : index
    %c0_9 = arith.constant 0 : index
    %c0_10 = arith.constant 0 : index
    %12 = vector.load %arg5[%c0_8, %c0_9, %c0_10] : memref<1x1x256xf32, #tpu.memory_space<vmem>>, vector<1x1x256xf32>
    %13 = vector.shape_cast %12 : vector<1x1x256xf32> to vector<1x256xf32>
    %14 = vector.shape_cast %11 : vector<1x256xf32> to vector<1x1x256xf32>
    tpu.vector_store %arg5[%c0_8, %c0_9, %c0_10], %14 {strides = array<i32>} : memref<1x1x256xf32, #tpu.memory_space<vmem>>, vector<1x1x256xf32>,
    return
  }
  func.func @transform_0(%arg0: i32, %arg1: i32) -> (i32, i32, i32) {
    %c0_i32 = arith.constant 0 : i32
    %c0_i32_0 = arith.constant 0 : i32
    return %arg0, %arg1, %c0_i32 : i32, i32, i32
  }
  func.func @transform_1(%arg0: i32, %arg1: i32) -> (i32, i32) {
    %c0_i32 = arith.constant 0 : i32
    %c0_i32_0 = arith.constant 0 : i32
    %c0_i32_1 = arith.constant 0 : i32
    return %c0_i32, %c0_i32_0 : i32, i32
  }
  func.func @transform_2(%arg0: i32, %arg1: i32) -> (i32, i32) {
    %c0_i32 = arith.constant 0 : i32
    %c0_i32_0 = arith.constant 0 : i32
    %c0_i32_1 = arith.constant 0 : i32
    return %c0_i32, %c0_i32_0 : i32, i32
  }
  func.func @transform_3(%arg0: i32, %arg1: i32) -> (i32, i32, i32) {
    %c0_i32 = arith.constant 0 : i32
    %c0_i32_0 = arith.constant 0 : i32
    return %arg0, %c0_i32, %arg1 : i32, i32, i32
  }
}

module attributes {stable_mosaic.version = 11 : i64} {
  func.func @_attention_kernel(%arg0: i32, %arg1: i32, %arg2: memref<1x16x16xf32, #tpu.memory_space<vmem>>, %arg3: memref<1x16x16xf32, #tpu.memory_space<vmem>>, %arg4: memref<1x16x32xbf16, #tpu.memory_space<vmem>>, %arg5: memref<1x16x32xf32, #tpu.memory_space<vmem>>, %arg6: memref<1x16x16xf32, #tpu.memory_space<vmem>>) attributes {dimension_semantics = [#tpu.dimension_semantics<parallel>, #tpu.dimension_semantics<parallel>], iteration_bounds = array<i64: 2, 1>, scalar_prefetch = 0 : i64, scratch_operands = 0 : i64, tpu.core_type = #tpu.core_type<tc>, window_params = [{transform_indices = @transform_0, window_bounds = array<i64: 1, 16, 16>}, {transform_indices = @transform_1, window_bounds = array<i64: 1, 16, 16>}, {transform_indices = @transform_2, window_bounds = array<i64: 1, 16, 32>}, {transform_indices = @transform_3, window_bounds = array<i64: 1, 16, 32>}, {transform_indices = @transform_4, window_bounds = array<i64: 1, 16, 16>}]} {
    %c0 = arith.constant 0 : index
    %c0_0 = arith.constant 0 : index
    %c0_1 = arith.constant 0 : index
    %0 = vector.load %arg2[%c0, %c0_0, %c0_1] : memref<1x16x16xf32, #tpu.memory_space<vmem>>, vector<1x16x16xf32>
    %1 = vector.shape_cast %0 : vector<1x16x16xf32> to vector<16x16xf32>
    %cst = arith.constant dense<0.000000e+00> : vector<16xf32>
    %2 = vector.multi_reduction <add>, %1, %cst [1] : vector<16x16xf32> to vector<16xf32>
    %3 = vector.shape_cast %2 : vector<16xf32> to vector<16x1xf32>
    %cst_2 = arith.constant 1.600000e+01 : f32
    %4 = vector.broadcast %cst_2 : f32 to vector<16x1xf32>
    %5 = arith.divf %3, %4 : vector<16x1xf32>
    %6 = math.absf %5 : vector<16x1xf32>
    %cst_3 = arith.constant 1.000000e-10 : f32
    %7 = vector.broadcast %cst_3 : f32 to vector<16x1xf32>
    %8 = arith.addf %6, %7 : vector<16x1xf32>
    %9 = vector.broadcast %8 : vector<16x1xf32> to vector<16x16xf32>
    %10 = arith.divf %1, %9 : vector<16x16xf32>
    %c0_4 = arith.constant 0 : index
    %c0_5 = arith.constant 0 : index
    %c0_6 = arith.constant 0 : index
    %11 = vector.load %arg3[%c0_4, %c0_5, %c0_6] : memref<1x16x16xf32, #tpu.memory_space<vmem>>, vector<1x16x16xf32>
    %12 = vector.shape_cast %11 : vector<1x16x16xf32> to vector<16x16xf32>
    %cst_7 = arith.constant 0.000000e+00 : f32
    %13 = vector.broadcast %cst_7 : f32 to vector<16x16xf32>
    %14 = arith.cmpf one, %12, %13 : vector<16x16xf32>
    %cst_8 = arith.constant -9.000000e+15 : f32
    %15 = vector.broadcast %cst_8 : f32 to vector<16x16xf32>
    %16 = arith.select %14, %10, %15 : vector<16x16xi1>, vector<16x16xf32>
    %cst_9 = arith.constant dense<0xFF800000> : vector<16xf32>
    %17 = vector.multi_reduction <maximumf>, %16, %cst_9 [1] : vector<16x16xf32> to vector<16xf32>
    %18 = vector.shape_cast %17 : vector<16xf32> to vector<16x1xf32>
    %19 = vector.broadcast %18 : vector<16x1xf32> to vector<16x16xf32>
    %20 = arith.subf %16, %19 : vector<16x16xf32>
    %21 = math.exp %20 : vector<16x16xf32>
    %cst_10 = arith.constant dense<0.000000e+00> : vector<16xf32>
    %22 = vector.multi_reduction <add>, %21, %cst_10 [1] : vector<16x16xf32> to vector<16xf32>
    %23 = vector.shape_cast %22 : vector<16xf32> to vector<16x1xf32>
    %24 = vector.broadcast %23 : vector<16x1xf32> to vector<16x16xf32>
    %25 = arith.divf %21, %24 : vector<16x16xf32>
    %c0_11 = arith.constant 0 : index
    %c0_12 = arith.constant 0 : index
    %c0_13 = arith.constant 0 : index
    %26 = vector.load %arg6[%c0_11, %c0_12, %c0_13] : memref<1x16x16xf32, #tpu.memory_space<vmem>>, vector<1x16x16xf32>
    %27 = vector.shape_cast %26 : vector<1x16x16xf32> to vector<16x16xf32>
    %28 = vector.shape_cast %25 : vector<16x16xf32> to vector<1x16x16xf32>
    tpu.vector_store %arg6[%c0_11, %c0_12, %c0_13], %28 {strides = array<i32>} : memref<1x16x16xf32, #tpu.memory_space<vmem>>, vector<1x16x16xf32>,
    %29 = arith.truncf %25 : vector<16x16xf32> to vector<16x16xbf16>
    %c0_14 = arith.constant 0 : index
    %c0_15 = arith.constant 0 : index
    %c0_16 = arith.constant 0 : index
    %30 = vector.load %arg4[%c0_14, %c0_15, %c0_16] : memref<1x16x32xbf16, #tpu.memory_space<vmem>>, vector<1x16x32xbf16>
    %31 = vector.shape_cast %30 : vector<1x16x32xbf16> to vector<16x32xbf16>
    %cst_17 = arith.constant dense<0.000000e+00> : vector<16x32xf32>
    %32 = tpu.matmul %29, %31, %cst_17 {dimension_numbers = #tpu.dot_dimension_numbers<[1], [0], [0], [1], [0, 0, 1, 1], [], []>} : vector<16x16xbf16>, vector<16x32xbf16>, vector<16x32xf32> -> vector<16x32xf32>
    %cst_18 = arith.constant 0.000000e+00 : f32
    %33 = vector.broadcast %cst_18 : f32 to vector<16x32xf32>
    %34 = arith.maximumf %32, %33 : vector<16x32xf32>
    %c0_19 = arith.constant 0 : index
    %c0_20 = arith.constant 0 : index
    %c0_21 = arith.constant 0 : index
    %35 = vector.load %arg5[%c0_19, %c0_20, %c0_21] : memref<1x16x32xf32, #tpu.memory_space<vmem>>, vector<1x16x32xf32>
    %36 = vector.shape_cast %35 : vector<1x16x32xf32> to vector<16x32xf32>
    %37 = vector.shape_cast %34 : vector<16x32xf32> to vector<1x16x32xf32>
    tpu.vector_store %arg5[%c0_19, %c0_20, %c0_21], %37 {strides = array<i32>} : memref<1x16x32xf32, #tpu.memory_space<vmem>>, vector<1x16x32xf32>,
    return
  }
  func.func @transform_0(%arg0: i32, %arg1: i32) -> (i32, i32, i32) {
    %c0_i32 = arith.constant 0 : i32
    %c0_i32_0 = arith.constant 0 : i32
    return %arg0, %arg1, %c0_i32 : i32, i32, i32
  }
  func.func @transform_1(%arg0: i32, %arg1: i32) -> (i32, i32, i32) {
    %c0_i32 = arith.constant 0 : i32
    %c0_i32_0 = arith.constant 0 : i32
    return %arg0, %arg1, %c0_i32 : i32, i32, i32
  }
  func.func @transform_2(%arg0: i32, %arg1: i32) -> (i32, i32, i32) {
    %c0_i32 = arith.constant 0 : i32
    %c0_i32_0 = arith.constant 0 : i32
    %c0_i32_1 = arith.constant 0 : i32
    return %arg0, %c0_i32, %c0_i32_0 : i32, i32, i32
  }
  func.func @transform_3(%arg0: i32, %arg1: i32) -> (i32, i32, i32) {
    %c0_i32 = arith.constant 0 : i32
    %c0_i32_0 = arith.constant 0 : i32
    return %arg0, %arg1, %c0_i32 : i32, i32, i32
  }
  func.func @transform_4(%arg0: i32, %arg1: i32) -> (i32, i32, i32) {
    %c0_i32 = arith.constant 0 : i32
    %c0_i32_0 = arith.constant 0 : i32
    return %arg0, %arg1, %c0_i32 : i32, i32, i32
  }
}

</mosaic_0001>

<bundles_post_ra>
// kernel: trans_gat_forward.3
= control target key start
LH: loop header
LB: loop body
LE: loop exit
PB: predicated region body
PF: predicated region fallthrough
CT: control target
= control target key end

     0   :  { %10 = vsyncpa [#allocation3], 0  ;;  %s1027_s0 = inlined_call_operand.vmem [shape: f32[2,16,16], index: 0, kind: input, shape index: {}]   ;;  %s1028_s1 = inlined_call_operand.vmem [shape: f32[2,16,16], index: 1, kind: input, shape index: {}]   ;;  %s1029_s2 = inlined_call_operand.vmem [shape: bf16[2,16,32], index: 2, kind: input, shape index: {}]   ;;  %s1030_s3 = inlined_call_operand.hbm [shape: f32[2,16,32], index: 3, kind: output, shape index: {0}]   ;;  %s1031_s4 = inlined_call_operand.hbm [shape: f32[2,16,16], index: 4, kind: output, shape index: {1}]  }
   0x1   :  { %12 = vsyncpa [#allocation3 + $0x1], 0 }
   0x2   :  { %13 = vsyncpa [#allocation5], 0 }
   0x3   :  { %15 = vsyncpa [#allocation5 + $0x1], 0  ;;  %s845_s15 = smov 0   ;;  %s847_s16 = smov 0  }
   0x4   :  { %s849_s17 = smov 0   ;;  %s851_s18 = smov 0  }
   0x5   :  { %s853_s19 = smov 0   ;;  %s855_s20 = smov 0  }
   0x6 LB: > { %s589_s21 = sadd.s32 4294967295, %s812_s20   ;;  %s590_s22 = sadd.s32 4294967294, %s812_s20   ;;  %s812_s20 = sphi %s855_s20, %s21_s20   ;;  %s808_s19 = sphi %s853_s19, %s1038_s19   ;;  %s804_s18 = sphi %s851_s18, %s1037_s18   ;;  %s800_s17 = sphi %s849_s17, %s1036_s17   ;;  %s796_s16 = sphi %s847_s16, %s1035_s16   ;;  %s792_s15 = sphi %s845_s15, %s1034_s15  }
   0x7   : > { %s33_s23 = sadd.s32 1, %s808_s19  ;;  %s124_s24 = sadd.s32 1, %s800_s17 }
   0x8   : > { %p35_p0 = scmp.ge.s32.totalorder %s33_s23, 2  ;;  %p134_p1 = scmp.ne.s32.totalorder %s800_s17, %s796_s16 }
   0x9   : > { %p135_p2 = scmp.eq.s32.totalorder %s589_s21, 1  ;;  %p140_p3 = scmp.ne.s32.totalorder %s796_s16, %s792_s15 }
   0xa   : > { %s1040_s23 = smov (%p35_p0, %s33_s23), 0  ;;  %p141_p5 = scmp.eq.s32.totalorder %s590_s22, 1 }
   0xb   : > { %p885_p4 = por %p135_p2, %p134_p1  ;;  %s119_s26 = ssub.s32 %s808_s19, %s1040_s23 }
   0xc   : > { %p593_p6 = scmp.ge.s32.totalorder %s812_s20, 1  ;;  %p122_p7 = scmp.eq.s32.totalorder %s119_s26, 0 }
   0xd   : > { %p892_p8 = por %p141_p5, %p140_p3  ;;  %p221_p9 = scmp.lt.s32.totalorder %s812_s20, 3 }
   0xe   : > { %s898_s28 = scalar_select %p122_p7, %s800_s17, %s124_s24  }
   0xf   : > { %p222_p10 = pnand %p593_p6, %p221_p9 }
  0x10   : > { %p271_p11 = scmp.lt.s32.totalorder (!%p222_p10), %s804_s18, 1  ;;  %vm300_vm0 = vcmask (!%p222_p10), 130048   ;;  %v814_v32 = vmov (!%p222_p10), 0.0   ;;  %vm815_vm3 = vmmov (!%p222_p10), 0   ;;  %s922_s21 = sand.u32 (!%p222_p10), 1, %s796_s16  }
  0x11   : > { %225 = sbr.rel (%p222_p10) target bundleno = 742 (0x2e6), region = 32  ;;  %619 = vmatprep.subr.bf16.mxu0 (!%p222_p10), %v814_v32  ;;  %621 = vmatprep.mubr.msk.bf16.mxu0 (!%p222_p10), %vm815_vm3, %v814_v32  ;;  %s594_s22 = sshll.u32 (!%p222_p10), %s922_s21, 4 }
  0x12   : > { %s269_s24 = scalar_lea.vmem (!%p222_p10), [#allocation4], %s594_s22  ;;  %s615_s26 = sshll.u32 (!%p222_p10), %s804_s18, 8 }
  0x13   : > { %s936_s6 = scalar_lea.hbm (!%p222_p10), %s1031_s4, %s615_s26  ;;  %s816_s9 = smov (!%p222_p10), [#allocation4]  }
  0x18   : > { %s902_s29 = scalar_select %p271_p11, %s804_s18, 1 }
  0x1a   : > { %s612_s30 = sshll.u32 %s902_s29, 4  ;;  %s614_s11 = sshll.u32 %s902_s29, 3 }
  0x1b   : > { %s278_s7 = scalar_lea.vmem %s1027_s0, %s612_s30  ;;  %s288_s10 = scalar_lea.vmem %s1028_s1, %s612_s30 }
  0x1c   : > { %v298_v0 = vld [vmem:[%s278_s7] sm:$0xff]  ;;  %v299_v1 = vld [vmem:[%s278_s7 + $0x8] sm:$0xff]  ;;  %s294_s14 = scalar_lea.vmem %s1029_s2, %s614_s11  ;;  %s445_s29 = sshll.u32 %s269_s24, 4  ;;  %s938_s29 = int_to_ptr.vmem [resolvable:$true] %s445_s29 }
  0x1d   : > { %v301_v2 = vsel %vm300_vm0, %v298_v0, 0.0  ;;  %v304_v3 = vsel %vm300_vm0, %v299_v1, 0.0  ;;  %v318_v12 = vld [vmem:[%s288_s10] sm:$0xff]  ;;  %v319_v15 = vld [vmem:[%s288_s10 + $0x8] sm:$0xff]  ;;  %s412_s7 = scalar_lea.sflag [#allocation5], %s922_s21  ;;  %s702_s8 = scalar_lea.vmem %s938_s29, 256 }
  0x1e   : > { %302 = vadd.xlane.f32.xlu0 %v301_v2  ;;  %vm320_vm1 = vcmp.ne.f32.partialorder %v318_v12, 0.0  ;;  %vm321_vm2 = vcmp.ne.f32.partialorder %v319_v15, 0.0  ;;  %v689_v33 = vld [vmem:[%s294_s14] sm:$0xff]   ;;  %p703_p12 = scmp.ne.s32.totalorder %s938_s29, %s702_s8  ;;  %s706_s10 = sshll.u32 %s816_s9, 4  ;;  %s707_s10 = int_to_ptr.vmem [resolvable:$false] %s706_s10 }
  0x1f   : > { %620 = vmatpush3.bf16.msra.mxu0 %v689_v33  ;;  %s708_s11 = scalar_lea.vmem %s707_s10, 512  ;;  %p709_p1 = scmp.lt.s32.totalorder %s938_s29, %s707_s10 }
  0x20   : > { %p704_p13 = pnand %p703_p12, %p885_p4  ;;  %p710_p2 = scmp.lt.s32.totalorder %s708_s11, %s702_s8 }
  0x22   : > { %305 = vadd.xlane.f32.xlu0 %v304_v3  ;;  %p705_p0 = pneg %p704_p13  ;;  %p711_p3 = por %p710_p2, %p709_p1 }
  0x24   : > { %p712_p5 = pnand %p711_p3, %p705_p0 }
  0xab   : > { %v303_v4 = vpop.xlane.xlu0 %302 }
  0xac   : > { %v308_v5 = vmul.f32 0.0625, %v303_v4 }
  0xae   : > { %v310_v6 = vand.u32 2147483647, %v308_v5 }
  0xaf   : > { %v306_v7 = vpop.xlane.xlu0 %305 }
  0xb0   : > { %v312_v8 = vadd.f32 1e-10, %v310_v6  ;;  %v309_v9 = vmul.f32 0.0625, %v306_v7 }
  0xb2   : > { %690 = vrcp.f32 %v312_v8  ;;  %v311_v10 = vand.u32 2147483647, %v309_v9 }
  0xb4   : > { %v313_v11 = vadd.f32 1e-10, %v311_v10 }
  0xb6   : > { %692 = vrcp.f32 %v313_v11 }
  0xbc   : > { %v691_v13 = vpop.eup %690 }
  0xbd   : > { %v315_v14 = vmul.f32 %v691_v13, %v298_v0 }
  0xbf   : > { %v322_v16 = vsel %vm320_vm1, %v315_v14, -9e+15 }
  0xc0   : > { %v693_v17 = vpop.eup %692  ;;  %v324_v18 = vsel %vm300_vm0, %v322_v16, -inf }
  0xc1   : > { %325 = vmax.xlane.f32.xlu1 %v324_v18  ;;  %v317_v19 = vmul.f32 %v693_v17, %v299_v1 }
  0xc3   : > { %v323_v20 = vsel %vm321_vm2, %v317_v19, -9e+15 }
  0xc4   : > { %v327_v21 = vsel %vm300_vm0, %v323_v20, -inf }
  0xc5   : > { %328 = vmax.xlane.f32.xlu1 %v327_v21 }
 0x14e   : > { %v326_v22 = vpop.xlane.xlu1 %325 }
 0x14f   : > { %v330_v23 = vsub.f32 %v322_v16, %v326_v22 }
 0x151   : > { %v332_v24 = vmul.f32 1.442695, %v330_v23 }
 0x152   : > { %v329_v25 = vpop.xlane.xlu1 %328 }
 0x153   : > { %694 = vpow2.f32 %v332_v24  ;;  %v331_v26 = vsub.f32 %v323_v20, %v329_v25 }
 0x155   : > { %v334_v27 = vmul.f32 1.442695, %v331_v26 }
 0x157   : > { %696 = vpow2.f32 %v334_v27 }
 0x15d   : > { %v695_v28 = vpop.eup %694 }
 0x15e   : > { %v336_v29 = vsel %vm300_vm0, %v695_v28, 0.0 }
 0x15f   : > { %337 = vadd.xlane.f32.xlu0 %v336_v29 }
 0x161   : > { %v697_v30 = vpop.eup %696 }
 0x162   : > { %v339_v31 = vsel %vm300_vm0, %v697_v30, 0.0 }
 0x163   : > { %340 = vadd.xlane.f32.xlu1 %v339_v31 }
 0x1ec   : > { %v338_v34 = vpop.xlane.xlu0 %337 }
 0x1ed   : > { %698 = vrcp.f32 %v338_v34 }
 0x1f0   : > { %v341_v35 = vpop.xlane.xlu1 %340 }
 0x1f1   : > { %700 = vrcp.f32 %v341_v35 }
 0x1f7   : > { %v699_v36 = vpop.eup %698 }
 0x1f8   : > { %v343_v37 = vmul.f32 %v699_v36, %v695_v28 }
 0x1fa   : > { %346 = vst.msk [vmem:[%s269_s24] sm:$0xff] %vm300_vm0, %v343_v37 }
 0x1fb   : > { %v701_v38 = vpop.eup %700 }
 0x1fc   : > { %v345_v39 = vmul.f32 %v701_v38, %v697_v30 }
 0x1fe   : > { %v348_v40 = vpack.c.bf16 %v345_v39, %v343_v37  ;;  %347 = vst.msk [vmem:[%s269_s24 + $0x8] sm:$0xff] %vm300_vm0, %v345_v39 }
 0x200   : > { %622 = vmatmul.mubr.msk.bf16.vlgmr.msra.gmra.mrb[0].mxu0 %vm300_vm0, %v348_v40 }
 0x201   : > { %715 = shalt.err (!%p712_p5)
}
 0x202   : > { %s716_s12 = scalar_lea.hbm %s936_s6, 256  ;;  %s720_s24 = scalar_lea.hbm %s1031_s4, 512 }
 0x203   : > { %p717_p6 = scmp.ne.s32.totalorder %s936_s6, %s716_s12  ;;  %p721_p10 = scmp.lt.u32.totalorder %s936_s6, %s1031_s4 }
 0x204   : > { %p722_p11 = scmp.lt.u32.totalorder %s720_s24, %s716_s12  ;;  %p724_p13 = scmp.lt.u32.totalorder %s716_s12, %s936_s6 }
 0x205   : > { %p718_p7 = pnand %p717_p6, %p885_p4 }
 0x206   : > { %p723_p12 = por %p722_p11, %p721_p10 }
 0x207   : > { %p719_p9 = pneg %p718_p7 }
 0x208   : > { %p725_p0 = por %p724_p13, %p723_p12 }
 0x20a   : > { %p726_p1 = pnand %p725_p0, %p719_p9 }
 0x20c   : > { %729 = shalt.err (!%p726_p1)
}
 0x20d   : > { %s817_s8 = smov 128   ;;  %s818_s9 = smov 8   ;;  %vm403_vm4 = vcmask 261120  }
 0x20e   : > { %626 = dma.vmem_to_hbm [thread:$0]  (%p885_p4), %s938_s29, 256, %s936_s6, %s412_s7, %s817_s8, %s817_s8, %s818_s9  }
 0x20f   : > { %s262_s10 = scalar_lea.vmem [#allocation2], %s594_s22  ;;  %s976_s22 = scalar_lea.hbm %s1030_s3, %s615_s26 }
 0x210   : > { %s427_s11 = sshll.u32 %s262_s10, 4  ;;  %s407_s6 = scalar_lea.sflag [#allocation3], %s922_s21  ;;  %s969_s11 = int_to_ptr.vmem [resolvable:$true] %s427_s11 }
 0x211   : > { %s730_s7 = scalar_lea.vmem %s969_s11, 256  ;;  %s819_s13 = smov [#allocation2]  }
 0x212   : > { %p731_p2 = scmp.ne.s32.totalorder %s969_s11, %s730_s7  ;;  %s734_s14 = sshll.u32 %s819_s13, 4  ;;  %s735_s14 = int_to_ptr.vmem [resolvable:$false] %s734_s14 }
 0x213   : > { %s736_s24 = scalar_lea.vmem %s735_s14, 512  ;;  %p737_p6 = scmp.lt.s32.totalorder %s969_s11, %s735_s14 }
 0x214   : > { %p732_p3 = pnand %p731_p2, %p885_p4  ;;  %p738_p7 = scmp.lt.s32.totalorder %s736_s24, %s730_s7 }
 0x216   : > { %p733_p5 = pneg %p732_p3  ;;  %p739_p9 = por %p738_p7, %p737_p6 }
 0x218   : > { %p740_p10 = pnand %p739_p9, %p733_p5 }
 0x2d3   : > { %v394_v41 = vpop.f32.mrb[0].mxu0 }
 0x2d4   : > { %v401_v42 = vmax.f32 %v394_v41, 0.0  ;;  %v623_v43 = vpop.f32.mrb[1].mxu0 }
 0x2d5   : > { %v397_v44 = vpop.f32.mrb[2].mxu0 }
 0x2d6   : > { %404 = vst.msk [vmem:[%s262_s10] sm:$0xff] %vm403_vm4, %v401_v42  ;;  %v402_v45 = vmax.f32 %v397_v44, 0.0  ;;  %v624_v46 = vpop.f32.mrb[3].mxu0 }
 0x2d8   : > { %405 = vst.msk [vmem:[%s262_s10 + $0x8] sm:$0xff] %vm403_vm4, %v402_v45 }
 0x2d9   : > { %743 = shalt.err (!%p740_p10)
}
 0x2da   : > { %s744_s18 = scalar_lea.hbm %s976_s22, 256  ;;  %s748_s5 = scalar_lea.hbm %s1030_s3, 512 }
 0x2db   : > { %p745_p11 = scmp.ne.s32.totalorder %s976_s22, %s744_s18  ;;  %p749_p0 = scmp.lt.u32.totalorder %s976_s22, %s1030_s3 }
 0x2dc   : > { %p750_p1 = scmp.lt.u32.totalorder %s748_s5, %s744_s18  ;;  %p752_p3 = scmp.lt.u32.totalorder %s744_s18, %s976_s22 }
 0x2dd   : > { %p746_p12 = pnand %p745_p11, %p885_p4 }
 0x2de   : > { %p751_p2 = por %p750_p1, %p749_p0 }
 0x2df   : > { %p747_p13 = pneg %p746_p12 }
 0x2e0   : > { %p753_p5 = por %p752_p3, %p751_p2 }
 0x2e2   : > { %p754_p6 = pnand %p753_p5, %p747_p13 }
 0x2e4   : > { %757 = shalt.err (!%p754_p6)
}
 0x2e5   : > { %625 = dma.vmem_to_hbm [thread:$0]  (%p885_p4), %s969_s11, 256, %s976_s22, %s407_s6, %s817_s8, %s817_s8, %s818_s9  }
 0x2e6 PF: > { %p636_p7 = scmp.ge.s32.totalorder %s812_s20, 2  ;;  %s460_s29 = sand.u32 1, %s792_s15  }
 0x2e7   : > { %s461_s7 = scalar_lea.sflag [#allocation3], %s460_s29 }
 0x2e8   : > { %p630_p9 = pnand %p636_p7, %p892_p8 }
 0x2ea   : > { %783 = dma.done.wait (!%p630_p9), %s461_s7, 256  }
 0x2eb   : > { %785 = vsyncadd (!%p630_p9), %s461_s7, 4294967040  ;;  %s470_s25 = scalar_lea.sflag [#allocation5], %s460_s29 }
 0x2ec   : > { %787 = dma.done.wait (!%p630_p9), %s470_s25, 256  }
 0x2ed   : > { %789 = vsyncadd (!%p630_p9), %s470_s25, 4294967040  ;;  %s21_s20 = sadd.s32 1, %s812_s20   ;;  %s1034_s15 = smov %s796_s16 }
 0x2ee   : > { %p18_p10 = scmp.ge.s32.totalorder %s21_s20, 4   ;;  %s1035_s16 = smov %s800_s17 }
 0x2ef   : > { %s1036_s17 = smov %s898_s28  ;;  %s1037_s18 = smov %s808_s19 }
 0x2f0   : > { %s1038_s19 = smov %s1040_s23  ;;  %20 = sbr.rel (!%p18_p10) target bundleno = 6 (0x6), region = 90 }
 0x2f7   :  { %475 = vsyncpa [#allocation3], 1 }
 0x2f8   :  { %477 = vsyncpa [#allocation3 + $0x1], 1 }
 0x2f9   :  { %478 = vsyncpa [#allocation5], 1 }
 0x2fa   :  { %480 = vsyncpa [#allocation5 + $0x1], 1 }

// kernel: trans_gat_forward.2
= control target key start
LH: loop header
LB: loop body
LE: loop exit
PB: predicated region body
PF: predicated region fallthrough
CT: control target
= control target key end

     0   :  { %s684_s12 = smov 0   ;;  %s686_s13 = smov 0   ;;  %s809_s0 = inlined_call_operand.vmem [shape: f32[2,256,32], index: 0, kind: input, shape index: {}]   ;;  %s810_s1 = inlined_call_operand.vmem [shape: bf16[32,32], index: 1, kind: input, shape index: {}]   ;;  %s811_s2 = inlined_call_operand.vmem [shape: f32[32,1], index: 2, kind: input, shape index: {}]   ;;  %s812_s3 = inlined_call_operand.vmem [shape: f32[2,1,256], index: 3, kind: output, shape index: {}]  }
   0x1   :  { %s688_s14 = smov 0  }
   0x2 LB: > { %s25_s15 = sadd.s32 1, %s656_s13  ;;  %p545_p0 = scmp.ge.s32.totalorder %s660_s14, 1  ;;  %s660_s14 = sphi %s688_s14, %s13_s14   ;;  %s656_s13 = sphi %s686_s13, %s814_s13   ;;  %s652_s12 = sphi %s684_s12, %s813_s12  }
   0x3   : > { %p27_p1 = scmp.ge.s32.totalorder %s25_s15, 2  ;;  %p158_p2 = scmp.lt.s32.totalorder %s660_s14, 3 }
   0x5   : > { %s816_s15 = smov (%p27_p1, %s25_s15), 0  ;;  %p159_p3 = pnand %p545_p0, %p158_p2 }
   0x6   : > { %p190_p4 = scmp.lt.s32.totalorder (!%p159_p3), %s652_s12, 1  ;;  %v705_v0 = vld [vmem:[%s810_s1] sm:$0xff] (!%p159_p3)   ;;  %vm271_vm0 = vcmask (!%p159_p3), 261120   ;;  %v712_v1 = vld [vmem:[%s810_s1 + $0x8] sm:$0xff] (!%p159_p3)   ;;  %v662_v2 = vmov (!%p159_p3), 0   ;;  %v389_v4 = vld [vmem:[%s811_s2 + $0x10] sm:$0xff] (!%p159_p3) }
   0x7   : > { %162 = sbr.rel (%p159_p3) target bundleno = 329 (0x149), region = 32  ;;  %634 = vset.pattern.permute.xlu0 (!%p159_p3), %v662_v2  ;;  %v387_v3 = vld [vmem:[%s811_s2] sm:$0xff] (!%p159_p3)  ;;  %635 = vset.pattern.permute.xlu1 (!%p159_p3), %v662_v2  ;;  %v388_v5 = vld [vmem:[%s811_s2 + $0x8] sm:$0xff] (!%p159_p3)  ;;  %v390_v6 = vld [vmem:[%s811_s2 + $0x18] sm:$0xff] (!%p159_p3) }
   0x8   : > { %572 = vmatprep.mubr.msk.bf16.mxu0 (!%p159_p3), %vm271_vm0, %v705_v0  ;;  %393 = vperm.xlu0 (!%p159_p3), %634, %v387_v3  }
   0x9   : > { %574 = vmatprep.mubr.msk.bf16.mxu1 (!%p159_p3), %vm271_vm0, %v712_v1  ;;  %403 = vperm.xlu1 (!%p159_p3), %635, %v389_v4  }
   0xc   : > { %398 = vperm.xlu0 (!%p159_p3), %634, %v388_v5  }
   0xd   : > { %408 = vperm.xlu1 (!%p159_p3), %635, %v390_v6  }
   0xe   : > { %s818_s12 = smov (!%p190_p4, %s652_s12), 1 }
   0xf   : > { %s555_s24 = sshll.u32 %s818_s12, 8  ;;  %s548_s5 = sshll.u32 %s818_s12, 1 }
  0x10   : > { %s731_s29 = scalar_lea.vmem %s809_s0, %s555_s24  ;;  %s206_s8 = scalar_lea.vmem %s812_s3, %s548_s5 }
  0x11   : > { %v225_v7 = vld [vmem:[%s731_s29 + $0x80] sm:$0xff]  ;;  %v226_v8 = vld [vmem:[%s731_s29 + $0x88] sm:$0xff]  ;;  %v227_v12 = vld [vmem:[%s731_s29 + $0x90] sm:$0xff] }
  0x12   : > { %v209_v9 = vld [vmem:[%s731_s29] sm:$0xff]  ;;  %v249_v10 = vpack.c.bf16 %v226_v8, %v225_v7  ;;  %v210_v11 = vld [vmem:[%s731_s29 + $0x8] sm:$0xff]  ;;  %v228_v13 = vld [vmem:[%s731_s29 + $0x98] sm:$0xff] }
  0x13   : > { %v241_v14 = vpack.c.bf16 %v210_v11, %v209_v9  ;;  %v250_v15 = vpack.c.bf16 %v228_v13, %v227_v12  ;;  %v211_v16 = vld [vmem:[%s731_s29 + $0x10] sm:$0xff]  ;;  %v212_v17 = vld [vmem:[%s731_s29 + $0x18] sm:$0xff]  ;;  %v229_v20 = vld [vmem:[%s731_s29 + $0xa0] sm:$0xff] }
  0x14   : > { %592 = vmatprep.subr.msk.bf16.mxu0 %vm271_vm0, %v249_v10  ;;  %593 = vmatprep.subr.msk.bf16.mxu1 %vm271_vm0, %v249_v10  ;;  %v242_v19 = vpack.c.bf16 %v212_v17, %v211_v16  ;;  %v230_v21 = vld [vmem:[%s731_s29 + $0xa8] sm:$0xff]  ;;  %v213_v24 = vld [vmem:[%s731_s29 + $0x20] sm:$0xff]  ;;  %v231_v27 = vld [vmem:[%s731_s29 + $0xb0] sm:$0xff] }
  0x15   : > { %v279_v18 = vsel %vm271_vm0, %v241_v14, 0  ;;  %v251_v23 = vpack.c.bf16 %v230_v21, %v229_v20  ;;  %v214_v25 = vld [vmem:[%s731_s29 + $0x28] sm:$0xff]  ;;  %v232_v28 = vld [vmem:[%s731_s29 + $0xb8] sm:$0xff]  ;;  %v215_v31 = vld [vmem:[%s731_s29 + $0x30] sm:$0xff] }
  0x16   : > { %557 = vmatpush3.bf16.xpose.msra.mxu0 %v279_v18  ;;  %584 = vmatpush3.bf16.xpose.msra.mxu1 %v279_v18  ;;  %v282_v22 = vsel %vm271_vm0, %v242_v19, 0  ;;  %v243_v26 = vpack.c.bf16 %v214_v25, %v213_v24  ;;  %v252_v30 = vpack.c.bf16 %v232_v28, %v231_v27  ;;  %v216_v32 = vld [vmem:[%s731_s29 + $0x38] sm:$0xff]  ;;  %v233_v34 = vld [vmem:[%s731_s29 + $0xc0] sm:$0xff]  ;;  %v234_v35 = vld [vmem:[%s731_s29 + $0xc8] sm:$0xff] }
  0x17   : > { %594 = vmatprep.subr.msk.bf16.mxu0 %vm271_vm0, %v250_v15  ;;  %595 = vmatprep.subr.msk.bf16.mxu1 %vm271_vm0, %v250_v15  ;;  %v244_v33 = vpack.c.bf16 %v216_v32, %v215_v31  ;;  %v253_v37 = vpack.c.bf16 %v234_v35, %v233_v34  ;;  %v217_v38 = vld [vmem:[%s731_s29 + $0x40] sm:$0xff]  ;;  %v218_v39 = vld [vmem:[%s731_s29 + $0x48] sm:$0xff]  ;;  %v235_v41 = vld [vmem:[%s731_s29 + $0xd0] sm:$0xff] }
  0x18   : > { %v285_v29 = vsel %vm271_vm0, %v243_v26, 0  ;;  %v245_v40 = vpack.c.bf16 %v218_v39, %v217_v38  ;;  %v236_v42 = vld [vmem:[%s731_s29 + $0xd8] sm:$0xff]  ;;  %v219_v45 = vld [vmem:[%s731_s29 + $0x50] sm:$0xff]  ;;  %v237_v48 = vld [vmem:[%s731_s29 + $0xe0] sm:$0xff]  ;;  %v443_v38 = vlaneseq }
  0x19   : > { %v288_v36 = vsel %vm271_vm0, %v244_v33, 0  ;;  %v254_v44 = vpack.c.bf16 %v236_v42, %v235_v41  ;;  %v220_v46 = vld [vmem:[%s731_s29 + $0x58] sm:$0xff]  ;;  %v238_v49 = vld [vmem:[%s731_s29 + $0xe8] sm:$0xff]  ;;  %v221_v52 = vld [vmem:[%s731_s29 + $0x60] sm:$0xff] }
  0x1a   : > { %v291_v43 = vsel %vm271_vm0, %v245_v40, 0  ;;  %v246_v47 = vpack.c.bf16 %v220_v46, %v219_v45  ;;  %v255_v51 = vpack.c.bf16 %v238_v49, %v237_v48  ;;  %v222_v53 = vld [vmem:[%s731_s29 + $0x68] sm:$0xff]  ;;  %v239_v55 = vld [vmem:[%s731_s29 + $0xf0] sm:$0xff]  ;;  %v240_v56 = vld [vmem:[%s731_s29 + $0xf8] sm:$0xff]  ;;  %vm457_vm1 = vcmp.lt.s32.totalorder %v443_v38, 256 }
  0x1b   : > { %v247_v54 = vpack.c.bf16 %v222_v53, %v221_v52  ;;  %v256_v58 = vpack.c.bf16 %v240_v56, %v239_v55  ;;  %v223_v59 = vld [vmem:[%s731_s29 + $0x70] sm:$0xff]  ;;  %v224_v60 = vld [vmem:[%s731_s29 + $0x78] sm:$0xff] }
  0x1c   : > { %v294_v50 = vsel %vm271_vm0, %v246_v47, 0  ;;  %v248_v61 = vpack.c.bf16 %v224_v60, %v223_v59 }
  0x1d   : > { %v297_v57 = vsel %vm271_vm0, %v247_v54, 0 }
  0x1e   : > { %559 = vmatpush3.bf16.xpose.msra.mxu0 %v282_v22  ;;  %585 = vmatpush3.bf16.xpose.msra.mxu1 %v282_v22  ;;  %v300_v62 = vsel %vm271_vm0, %v248_v61, 0 }
  0x1f   : > { %596 = vmatprep.subr.msk.bf16.mxu0 %vm271_vm0, %v251_v23  ;;  %597 = vmatprep.subr.msk.bf16.mxu1 %vm271_vm0, %v251_v23 }
  0x26   : > { %561 = vmatpush3.bf16.xpose.msra.mxu0 %v285_v29  ;;  %586 = vmatpush3.bf16.xpose.msra.mxu1 %v285_v29 }
  0x27   : > { %598 = vmatprep.subr.msk.bf16.mxu0 %vm271_vm0, %v252_v30  ;;  %599 = vmatprep.subr.msk.bf16.mxu1 %vm271_vm0, %v252_v30 }
  0x2e   : > { %563 = vmatpush3.bf16.xpose.msra.mxu0 %v288_v36  ;;  %587 = vmatpush3.bf16.xpose.msra.mxu1 %v288_v36  ;;  %v663_v36 = vmov 1966171168  }
  0x2f   : > { %600 = vmatprep.subr.msk.bf16.mxu0 %vm271_vm0, %v253_v37  ;;  %601 = vmatprep.subr.msk.bf16.mxu1 %vm271_vm0, %v253_v37  ;;  %v441_v37 = vunpack.c.l.s4 %v663_v36 }
  0x36   : > { %565 = vmatpush3.bf16.xpose.msra.mxu0 %v291_v43  ;;  %588 = vmatpush3.bf16.xpose.msra.mxu1 %v291_v43  ;;  %v442_v43 = vunpack.c.0.s8 %v441_v37 }
  0x37   : > { %602 = vmatprep.subr.msk.bf16.mxu0 %vm271_vm0, %v254_v44  ;;  %603 = vmatprep.subr.msk.bf16.mxu1 %vm271_vm0, %v254_v44  ;;  %v444_v44 = vshrl.u32 %v443_v38, 7 }
  0x39   : > { %v445_v49 = vsub.s32 %v442_v43, %v444_v44 }
  0x3e   : > { %567 = vmatpush3.bf16.xpose.msra.mxu0 %v294_v50  ;;  %589 = vmatpush3.bf16.xpose.msra.mxu1 %v294_v50 }
  0x3f   : > { %604 = vmatprep.subr.msk.bf16.mxu0 %vm271_vm0, %v255_v51  ;;  %605 = vmatprep.subr.msk.bf16.mxu1 %vm271_vm0, %v255_v51 }
  0x46   : > { %569 = vmatpush3.bf16.xpose.msra.mxu0 %v297_v57  ;;  %590 = vmatpush3.bf16.xpose.msra.mxu1 %v297_v57 }
  0x47   : > { %606 = vmatprep.subr.msk.bf16.mxu0 %vm271_vm0, %v256_v58  ;;  %607 = vmatprep.subr.msk.bf16.mxu1 %vm271_vm0, %v256_v58 }
  0x4e   : > { %571 = vmatpush3.bf16.xpose.msra.mxu0 %v300_v62  ;;  %591 = vmatpush3.bf16.xpose.msra.mxu1 %v300_v62 }
  0x55   : > { %573 = vmatmul.mubr.msk.bf16.vlgmr.msra.gmra.mrb[0].mxu0 %vm271_vm0, %v705_v0  ;;  %575 = vmatmul.mubr.msk.bf16.vlgmr.msra.gmra.mrb[0].mxu1 %vm271_vm0, %v712_v1 }
  0x87   : > { %v394_v63 = vpop.permute.xlu0 %393 }
  0x88   : > { %v404_v2 = vpop.permute.xlu1 %403 }
  0x8b   : > { %v399_v15 = vpop.permute.xlu0 %398 }
  0x8c   : > { %v409_v23 = vpop.permute.xlu1 %408 }
 0x128   : > { %v360_v3 = vpop.f32.mrb[0].mxu0  ;;  %v370_v4 = vpop.f32.mrb[0].mxu1 }
 0x129   : > { %v379_v5 = vmax.f32 %v360_v3, 0.0  ;;  %v383_v6 = vmax.f32 %v370_v4, 0.0  ;;  %v362_v7 = vpop.f32.mrb[1].mxu0  ;;  %v372_v8 = vpop.f32.mrb[1].mxu1 }
 0x12a   : > { %v380_v9 = vmax.f32 %v362_v7, 0.0  ;;  %v364_v10 = vpop.f32.mrb[2].mxu0  ;;  %v374_v11 = vpop.f32.mrb[2].mxu1  ;;  %v384_v16 = vmax.f32 %v372_v8, 0.0 }
 0x12b   : > { %v381_v12 = vmax.f32 %v364_v10, 0.0  ;;  %v366_v13 = vpop.f32.mrb[3].mxu0  ;;  %v376_v14 = vpop.f32.mrb[3].mxu1  ;;  %v411_v17 = vmul.f32 %v394_v63, %v379_v5  ;;  %v415_v18 = vmul.f32 %v404_v2, %v383_v6  ;;  %v385_v19 = vmax.f32 %v374_v11, 0.0 }
 0x12c   : > { %v382_v0 = vmax.f32 %v366_v13, 0.0  ;;  %v412_v20 = vmul.f32 %v394_v63, %v380_v9  ;;  %v386_v22 = vmax.f32 %v376_v14, 0.0  ;;  %v416_v25 = vmul.f32 %v404_v2, %v384_v16 }
 0x12d   : > { %v413_v1 = vmul.f32 %v399_v15, %v381_v12  ;;  %v417_v27 = vmul.f32 %v409_v23, %v385_v19 }
 0x12e   : > { %v414_v21 = vmul.f32 %v399_v15, %v382_v0  ;;  %v418_v29 = vmul.f32 %v409_v23, %v386_v22 }
 0x12f   : > { %v419_v24 = vadd.f32 %v413_v1, %v411_v17 }
 0x130   : > { %v428_v26 = vadd.f32 %v414_v21, %v412_v20 }
 0x131   : > { %v420_v28 = vadd.f32 %v419_v24, %v415_v18 }
 0x132   : > { %v429_v30 = vadd.f32 %v428_v26, %v416_v25 }
 0x133   : > { %v421_v31 = vadd.f32 %v420_v28, %v417_v27 }
 0x134   : > { %v430_v32 = vadd.f32 %v429_v30, %v418_v29 }
 0x135   : > { %v422_v33 = vrot.slane %v421_v31, 4 }
 0x136   : > { %v431_v34 = vrot.slane %v430_v32, 4 }
 0x137   : > { %v423_v35 = vadd.f32 %v422_v33, %v421_v31 }
 0x138   : > { %v432_v39 = vadd.f32 %v431_v34, %v430_v32 }
 0x139   : > { %v424_v40 = vrot.slane %v423_v35, 2 }
 0x13a   : > { %v433_v41 = vrot.slane %v432_v39, 2 }
 0x13b   : > { %v425_v42 = vadd.f32 %v424_v40, %v423_v35 }
 0x13c   : > { %v434_v45 = vadd.f32 %v433_v41, %v432_v39 }
 0x13d   : > { %v426_v46 = vrot.slane %v425_v42, 1 }
 0x13e   : > { %v435_v47 = vrot.slane %v434_v45, 1 }
 0x13f   : > { %v427_v48 = vadd.f32 %v426_v46, %v425_v42 }
 0x140   : > { %v436_v50 = vadd.f32 %v435_v47, %v434_v45 }
 0x142   : > { %v439_v51 = vcombine.low %v427_v48, %v436_v50 }
 0x144   : > { %v446_v52 = vrot.slane %v439_v51, %v445_v49 }
 0x146   : > { %v453_v53 = vrot.slane %v446_v52, %v445_v49 }
 0x148   : > { %459 = vst.msk [vmem:[%s206_s8] sm:$0x3] %vm457_vm1, %v453_v53 }
 0x149 PF: > { %s13_s14 = sadd.s32 1, %s660_s14   ;;  %s813_s12 = smov %s656_s13 }
 0x14a   : > { %p10_p5 = scmp.ge.s32.totalorder %s13_s14, 4   ;;  %s814_s13 = smov %s816_s15 }
 0x14c   :  { %12 = sbr.rel (!%p10_p5) target bundleno = 2 (0x2), region = 62 }

</bundles_post_ra>
